<compile_context>
chip_gen: v7x
topology: tpu7x:2x2x1
jax: 0.10.0
libtpu: 0.0.40
codegen_flags: <defaults>
</compile_context>

<pallas_src>
import functools

import jax
import jax.numpy as jnp
from jax.experimental import pallas as pl
from jax.experimental.pallas import tpu as pltpu


def _round_up(x: int, m: int) -> int:
    return ((x + m - 1) // m) * m


def _vmem_capacity_bytes() -> int:
    """Generation-aware VMEM capacity; falls back to the v7x per-TC minimum."""
    try:
        return int(pltpu.get_tpu_info().vmem_capacity_bytes)
    except Exception:
        return 64 * 1024 * 1024


def _tower_fused_kernel(meta, x_in_ref, tables_ref, params_ref, out_ref):
    """Fused block-diagonal embedding gather + MLP + L2-normalize for one tile.

    meta = (n_tables, total_vpad, c_idx, layers, compute_dtype)
      layers = tuple of (row_offset, din_pad, dout_pad) into the packed params.
      c_idx  = lane where the float-encoded (shifted) indices start in x_in.
    """
    n_tables, total_vpad, c_idx, layers, cdt = meta
    tb = out_ref.shape[0]

    x_in = x_in_ref[...]                                        # (TB, d0_pad) f32, lane-dense

    # ---- block-diagonal embedding gather: ONE combined one-hot @ packed table ----
    # x_in[:, c_idx + t] holds float(index_t + row_offset_t); per-table one-hots
    # land in disjoint column ranges, so a single MXU matmul yields the full
    # torch.cat of all embedding lookups.  (Out-of-range indices silently gather
    # a wrong/zero row instead of erroring like nn.Embedding.)
    iota = jax.lax.broadcasted_iota(jnp.int32, (tb, total_vpad), 1)
    onehot = jnp.zeros((tb, total_vpad), jnp.float32)
    for t in range(n_tables):
        idx_t = x_in[:, c_idx + t:c_idx + t + 1].astype(jnp.int32)      # (TB, 1)
        onehot = onehot + (idx_t == iota).astype(jnp.float32)
    emb = jnp.dot(onehot.astype(cdt), tables_ref[...],
                  preferred_element_type=jnp.float32)                   # (TB, d0_pad)

    # x_num already sits in its columns of x_in; the index-stash columns feed
    # zero rows of the first weight matrix, so they never reach a real output.
    h = emb + x_in

    # ---- MLP from one packed, lane-aligned parameter buffer ----
    n_layers = len(layers)
    for li, (r0, din_p, dout_p) in enumerate(layers):
        w = params_ref[r0:r0 + din_p, 0:dout_p]                         # (din_p, dout_p)
        b = params_ref[r0 + din_p:r0 + din_p + 1, 0:dout_p].astype(jnp.float32)
        h = jnp.dot(h.astype(cdt), w, preferred_element_type=jnp.float32) + b
        if li < n_layers - 1:                                           # ReLU (f32, VPU)
            h = jnp.maximum(h, 0.0)

    # ---- F.normalize(p=2, dim=1): padded output columns are exactly zero, so
    # the sum of squares is exact and the (TB, 128k) store is unmasked.
    sumsq = jnp.sum(h * h, axis=1, keepdims=True)
    inv = jax.lax.rsqrt(jnp.maximum(sumsq, 1e-24))   # == 1/max(||h||_2, 1e-12), EUP slot
    out_ref[...] = (h * inv).astype(out_ref.dtype)


_RESIDENT_SINGLE_BUFFER_OK = True   # flipped off if this jax rejects pl.Buffered(1)


def _pick_batch_tile(batch: int, block_b) -> int:
    if block_b is not None:
        return max(8, _round_up(int(block_b), 8))
    if batch <= 8:
        return 8
    # Target ~1024-row tiles (amortizes ~0.35us/grid-step overhead), guarantee
    # >=2 grid steps so both v7x TensorCores get work, and split the batch as
    # evenly as possible so the padded tail is small.
    steps = max(2, -(-batch // 1024))
    return max(8, _round_up(-(-batch // steps), 8))


def tower_forward(x_in, packed_tables, packed_params, meta, dn_pad, out_dim,
                  block_b=None):
    """x_in: (B, d0_pad) f32 packed activation slab.  Returns (B, out_dim) f32."""
    n_tables, total_vpad, c_idx, layers, cdt = meta
    batch, d0_pad = x_in.shape
    c_max = packed_params.shape[1]

    tb = _pick_batch_tile(batch, block_b)
    b_pad = _round_up(batch, tb)
    if b_pad != batch:
        x_in = jnp.pad(x_in, ((0, b_pad - batch), (0, 0)))
    grid = (b_pad // tb,)

    # VMEM budget: double-buffered activation tiles + resident params/tables +
    # working headroom, clamped to ~3/4 of this generation's physical VMEM.
    itemsize = packed_params.dtype.itemsize
    resident = (packed_tables.size + packed_params.size) * itemsize
    act_tiles = tb * (d0_pad + dn_pad) * 4 * 2              # in + out, double-buffered
    work = tb * max(total_vpad, d0_pad, c_max) * 4 * 6      # onehot / h / temporaries
    cap = _vmem_capacity_bytes()
    vmem_limit = int(min(max(2 * resident + act_tiles + work, 16 * 1024 * 1024),
                         (cap * 3) // 4))

    kernel = functools.partial(_tower_fused_kernel, meta)

    def build(single_buffer_resident: bool):
        resident_mode = {}
        if single_buffer_resident:
            # constant index_map -> double-buffering the resident params/tables
            # buys nothing; single-buffer them (halves their VMEM footprint).
            resident_mode = dict(pipeline_mode=pl.Buffered(1))
        return pl.pallas_call(
            kernel,
            out_shape=jax.ShapeDtypeStruct((b_pad, dn_pad), jnp.float32),
            grid=grid,
            in_specs=[
                pl.BlockSpec((tb, d0_pad), lambda i: (i, 0)),               # packed activations
                pl.BlockSpec(packed_tables.shape, lambda i: (0, 0), **resident_mode),
                pl.BlockSpec(packed_params.shape, lambda i: (0, 0), **resident_mode),
            ],
            out_specs=pl.BlockSpec((tb, dn_pad), lambda i: (i, 0)),
            compiler_params=pltpu.CompilerParams(
                dimension_semantics=("parallel",),   # batch tiles shard across TCs
                vmem_limit_bytes=vmem_limit,
            ),
        )

    global _RESIDENT_SINGLE_BUFFER_OK
    if _RESIDENT_SINGLE_BUFFER_OK:
        try:
            out = build(True)(x_in, packed_tables, packed_params)
        except Exception:
            _RESIDENT_SINGLE_BUFFER_OK = False
            out = build(False)(x_in, packed_tables, packed_params)
    else:
        out = build(False)(x_in, packed_tables, packed_params)

    return out[:batch, :out_dim]


class TowerModelPallas:
    """JAX/Pallas re-implementation of TwoTower.TowerModel's forward pass."""

    def __init__(self, embedding_vocab_size, embedding_dim, num_continuous_feature,
                 layer_dims, key, param_dtype=jnp.bfloat16):
        assert (len(embedding_vocab_size) * embedding_dim + num_continuous_feature
                == layer_dims[0][0]), "first input dim of feed-forward network is wrong"
        for i in range(1, len(layer_dims)):
            assert layer_dims[i][0] == layer_dims[i - 1][1], "layer dims must chain"

        self.num_continuous_feature = num_continuous_feature
        self.layer_dims = layer_dims
        self.embedding_dim = embedding_dim
        self.param_dtype = param_dtype
        self.out_dim = layer_dims[-1][1]
        n_tables = len(embedding_vocab_size)
        self.n_tables = n_tables
        self.emb_total = n_tables * embedding_dim

        keys = jax.random.split(key, n_tables + 2 * len(layer_dims))
        k = 0
        # nn.Embedding default init: N(0, 1)   (f32 master copies kept for reference)
        self.embedding_tables = []
        for vocab in embedding_vocab_size.values():
            self.embedding_tables.append(
                jax.random.normal(keys[k], (vocab, embedding_dim), jnp.float32))
            k += 1
        # nn.Linear default init: U(-1/sqrt(fan_in), 1/sqrt(fan_in)); W stored (in, out)
        self.weights, self.biases = [], []
        for in_f, out_f in layer_dims:
            bound = 1.0 / (in_f ** 0.5)
            self.weights.append(jax.random.uniform(keys[k], (in_f, out_f), jnp.float32,
                                                   minval=-bound, maxval=bound))
            k += 1
            self.biases.append(jax.random.uniform(keys[k], (out_f,), jnp.float32,
                                                  minval=-bound, maxval=bound))
            k += 1

        total_vocab = sum(t.shape[0] for t in self.embedding_tables)
        # Indices travel value-encoded as f32 lanes of the packed input slab.
        assert total_vocab < (1 << 24), "index float-encoding needs total vocab < 2^24"
        # TODO(synk): for vocabularies beyond a few thousand rows per table, switch
        # to scalar-prefetched indices + HBM-resident tables (pl.ANY + per-row DMA)
        # instead of the VMEM-resident one-hot matmul gather.
        self.total_vpad = _round_up(max(total_vocab, 8), 128)   # lane-dense one-hot K

        # First-layer padded width: real input features + >= n_tables spare lanes
        # (used to stash the float-encoded indices), rounded to 128 lanes.
        self.d0_pad = _round_up(layer_dims[0][0] + n_tables, 128)
        self.c_idx = self.emb_total + num_continuous_feature

        # ---- block-diagonal packed embedding tables: (total_vpad, d0_pad) ----
        # Table t occupies rows [off_t, off_t+vocab_t), cols [t*emb, (t+1)*emb),
        # so one one-hot matmul reproduces torch.cat of all embedding lookups.
        offs, off = [], 0
        tables_bd = jnp.zeros((self.total_vpad, self.d0_pad), jnp.float32)
        for t_i, t in enumerate(self.embedding_tables):
            offs.append(off)
            tables_bd = tables_bd.at[off:off + t.shape[0],
                                     t_i * embedding_dim:(t_i + 1) * embedding_dim].set(t)
            off += t.shape[0]
        self.table_offsets = jnp.asarray(offs, jnp.int32)
        self.packed_tables = tables_bd.astype(param_dtype)

        # ---- packed MLP params: one lane-aligned (rows, 128k) buffer ----
        # Layer i: rows [r0, r0+din_p) hold W (zero-padded) and a 16-row bias slab
        # (row 0 used) follows, keeping every layer's row offset 16-aligned even
        # for sublane-packed bf16.  Padded weight cols / bias entries are zero, so
        # padded output columns stay exactly zero through ReLU / normalize.
        layers_meta, din_p, r = [], self.d0_pad, 0
        for (_, dout) in layer_dims:
            dout_p = _round_up(dout, 128)
            layers_meta.append((r, din_p, dout_p))
            r += din_p + 16
            din_p = dout_p                       # next layer consumes padded width
        c_max = max(m[2] for m in layers_meta)
        packed = jnp.zeros((r, c_max), jnp.float32)
        for (r0, dinp, _), w, b in zip(layers_meta, self.weights, self.biases):
            packed = packed.at[r0:r0 + w.shape[0], :w.shape[1]].set(w)
            packed = packed.at[r0 + dinp, :b.shape[0]].set(b)
        self.packed_params = packed.astype(param_dtype)
        self.dn_pad = layers_meta[-1][2]

        # Matmul operands use param_dtype (bf16 = native MXU dtype on v5e/v6e/v7x);
        # bias add / ReLU / normalize stay f32 on the VPU/EUP.
        self.meta = (n_tables, self.total_vpad, self.c_idx, tuple(layers_meta),
                     param_dtype)

    def __call__(self, x_cate, x_num, block_b=None):
        x_cate = x_cate.astype(jnp.int32)
        x_num = x_num.astype(jnp.float32)
        batch = x_cate.shape[0]
        # Pack ONE lane-dense activation slab:
        #   [ zeros(emb_total) | x_num | float(x_cate + table_row_offset) | 0 ... ]
        idx_f = (x_cate + self.table_offsets[None, :]).astype(jnp.float32)
        x_in = jnp.concatenate(
            [jnp.zeros((batch, self.emb_total), jnp.float32), x_num, idx_f], axis=1)
        x_in = jnp.pad(x_in, ((0, 0), (0, self.d0_pad - x_in.shape[1])))
        return tower_forward(x_in, self.packed_tables, self.packed_params,
                             self.meta, self.dn_pad, self.out_dim, block_b=block_b)


def _reference_forward(model, x_cate, x_num):
    """Pure-JAX reference using the same (param_dtype-rounded) parameters."""
    def q(a):
        return a.astype(model.param_dtype).astype(jnp.float32)
    embs = [jnp.take(q(t), x_cate[:, i], axis=0)
            for i, t in enumerate(model.embedding_tables)]
    h = jnp.concatenate(embs + [x_num.astype(jnp.float32)], axis=1)
    n = len(model.weights)
    for i, (w, b) in enumerate(zip(model.weights, model.biases)):
        h = h @ q(w) + q(b)
        if i < n - 1:
            h = jnp.maximum(h, 0.0)
    norm = jnp.sqrt(jnp.sum(h * h, axis=1, keepdims=True))
    return h / jnp.maximum(norm, 1e-12)


if __name__ == "__main__":
    key = jax.random.PRNGKey(0)
    k_params, k_cate, k_num = jax.random.split(key, 3)

    embedding_vocab_size = {"user_id": 10, "item_cat": 20, "region": 30}
    embedding_dim = 8
    num_continuous_feature = 8
    layer_dims = [(32, 32), (32, 16), (16, 8)]   # 3 * 8 + 8 = 32 input features
    batch = 8

    vocab_sizes = jnp.array(list(embedding_vocab_size.values()), jnp.int32)
    x_cate = (jax.random.randint(k_cate, (batch, len(embedding_vocab_size)), 0, 1 << 30)
              % vocab_sizes).astype(jnp.int32)
    x_num = jax.random.normal(k_num, (batch, num_continuous_feature), jnp.float32)

    # Default bf16 weight path (native MXU operand dtype on v5e/v6e/v7x).
    model_bf16 = TowerModelPallas(embedding_vocab_size, embedding_dim,
                                  num_continuous_feature, layer_dims, k_params,
                                  param_dtype=jnp.bfloat16)
    out_bf16 = jax.block_until_ready(model_bf16(x_cate, x_num))
    ref_bf16 = _reference_forward(model_bf16, x_cate, x_num)
    assert out_bf16.shape == (batch, layer_dims[-1][1])
    assert jnp.allclose(out_bf16, ref_bf16, atol=3e-2, rtol=3e-2), \
        "Pallas bf16 output mismatch vs reference"

    # f32 weight path: tight structural check against the pure-JAX reference.
    model_f32 = TowerModelPallas(embedding_vocab_size, embedding_dim,
                                 num_continuous_feature, layer_dims, k_params,
                                 param_dtype=jnp.float32)
    out_f32 = jax.block_until_ready(model_f32(x_cate, x_num))
    ref_f32 = _reference_forward(model_f32, x_cate, x_num)
    assert jnp.allclose(out_f32, ref_f32, atol=1e-3, rtol=1e-3), \
        "Pallas f32 output mismatch vs reference"

    print("KERNEL_OK")
</pallas_src>

<mosaic_0001>
module attributes {stable_mosaic.version = 11 : i64} {
  func.func @_tower_fused_kernel(%arg0: i32, %arg1: memref<8x128xf32, #tpu.memory_space<vmem>>, %arg2: memref<128x128xbf16, #tpu.memory_space<vmem>>, %arg3: memref<432x128xbf16, #tpu.memory_space<vmem>>, %arg4: memref<8x128xf32, #tpu.memory_space<vmem>>) attributes {dimension_semantics = [#tpu.dimension_semantics<parallel>], iteration_bounds = array<i64: 1>, scalar_prefetch = 0 : i64, scratch_operands = 0 : i64, tpu.core_type = #tpu.core_type<tc>, window_params = [{transform_indices = @transform_0, window_bounds = array<i64: 8, 128>}, {pipeline_mode = #tpu.pipeline_mode<synchronous>, transform_indices = @transform_1, window_bounds = array<i64: 128, 128>}, {pipeline_mode = #tpu.pipeline_mode<synchronous>, transform_indices = @transform_2, window_bounds = array<i64: 432, 128>}, {transform_indices = @transform_3, window_bounds = array<i64: 8, 128>}]} {
    %c0 = arith.constant 0 : index
    %c0_0 = arith.constant 0 : index
    %0 = vector.load %arg1[%c0, %c0_0] : memref<8x128xf32, #tpu.memory_space<vmem>>, vector<8x128xf32>
    %1 = tpu.iota {dimensions = array<i32: 1>} : vector<8x128xi32>
    %cst = arith.constant 0.000000e+00 : f32
    %2 = vector.broadcast %cst : f32 to vector<8x128xf32>
    %3 = vector.extract_strided_slice %0 {offsets = [0, 32], sizes = [8, 1], strides = [1, 1]} : vector<8x128xf32> to vector<8x1xf32>
    %4 = arith.fptosi %3 : vector<8x1xf32> to vector<8x1xi32>
    %5 = vector.broadcast %4 : vector<8x1xi32> to vector<8x128xi32>
    %6 = arith.cmpi eq, %5, %1 : vector<8x128xi32>
    %7 = arith.extui %6 : vector<8x128xi1> to vector<8x128xi32>
    %8 = arith.sitofp %7 : vector<8x128xi32> to vector<8x128xf32>
    %9 = arith.addf %2, %8 : vector<8x128xf32>
    %10 = vector.extract_strided_slice %0 {offsets = [0, 33], sizes = [8, 1], strides = [1, 1]} : vector<8x128xf32> to vector<8x1xf32>
    %11 = arith.fptosi %10 : vector<8x1xf32> to vector<8x1xi32>
    %12 = vector.broadcast %11 : vector<8x1xi32> to vector<8x128xi32>
    %13 = arith.cmpi eq, %12, %1 : vector<8x128xi32>
    %14 = arith.extui %13 : vector<8x128xi1> to vector<8x128xi32>
    %15 = arith.sitofp %14 : vector<8x128xi32> to vector<8x128xf32>
    %16 = arith.addf %9, %15 : vector<8x128xf32>
    %17 = vector.extract_strided_slice %0 {offsets = [0, 34], sizes = [8, 1], strides = [1, 1]} : vector<8x128xf32> to vector<8x1xf32>
    %18 = arith.fptosi %17 : vector<8x1xf32> to vector<8x1xi32>
    %19 = vector.broadcast %18 : vector<8x1xi32> to vector<8x128xi32>
    %20 = arith.cmpi eq, %19, %1 : vector<8x128xi32>
    %21 = arith.extui %20 : vector<8x128xi1> to vector<8x128xi32>
    %22 = arith.sitofp %21 : vector<8x128xi32> to vector<8x128xf32>
    %23 = arith.addf %16, %22 : vector<8x128xf32>
    %24 = arith.truncf %23 : vector<8x128xf32> to vector<8x128xbf16>
    %c0_1 = arith.constant 0 : index
    %c0_2 = arith.constant 0 : index
    %25 = vector.load %arg2[%c0_1, %c0_2] : memref<128x128xbf16, #tpu.memory_space<vmem>>, vector<128x128xbf16>
    %cst_3 = arith.constant dense<0.000000e+00> : vector<8x128xf32>
    %26 = tpu.matmul %24, %25, %cst_3 {dimension_numbers = #tpu.dot_dimension_numbers<[1], [0], [0], [1], [0, 0, 1, 1], [], []>} : vector<8x128xbf16>, vector<128x128xbf16>, vector<8x128xf32> -> vector<8x128xf32>
    %27 = arith.addf %26, %0 : vector<8x128xf32>
    %c0_4 = arith.constant 0 : index
    %c0_5 = arith.constant 0 : index
    %28 = vector.load %arg3[%c0_4, %c0_5] : memref<432x128xbf16, #tpu.memory_space<vmem>>, vector<128x128xbf16>
    %c128 = arith.constant 128 : index
    %c0_6 = arith.constant 0 : index
    %29 = vector.load %arg3[%c128, %c0_6] : memref<432x128xbf16, #tpu.memory_space<vmem>>, vector<1x128xbf16>
    %30 = arith.extf %29 : vector<1x128xbf16> to vector<1x128xf32>
    %31 = arith.truncf %27 : vector<8x128xf32> to vector<8x128xbf16>
    %cst_7 = arith.constant dense<0.000000e+00> : vector<8x128xf32>
    %32 = tpu.matmul %31, %28, %cst_7 {dimension_numbers = #tpu.dot_dimension_numbers<[1], [0], [0], [1], [0, 0, 1, 1], [], []>} : vector<8x128xbf16>, vector<128x128xbf16>, vector<8x128xf32> -> vector<8x128xf32>
    %33 = vector.broadcast %30 : vector<1x128xf32> to vector<8x128xf32>
    %34 = arith.addf %32, %33 : vector<8x128xf32>
    %cst_8 = arith.constant 0.000000e+00 : f32
    %35 = vector.broadcast %cst_8 : f32 to vector<8x128xf32>
    %36 = arith.maximumf %34, %35 : vector<8x128xf32>
    %c144 = arith.constant 144 : index
    %c0_9 = arith.constant 0 : index
    %37 = vector.load %arg3[%c144, %c0_9] : memref<432x128xbf16, #tpu.memory_space<vmem>>, vector<128x128xbf16>
    %c272 = arith.constant 272 : index
    %c0_10 = arith.constant 0 : index
    %38 = vector.load %arg3[%c272, %c0_10] : memref<432x128xbf16, #tpu.memory_space<vmem>>, vector<1x128xbf16>
    %39 = arith.extf %38 : vector<1x128xbf16> to vector<1x128xf32>
    %40 = arith.truncf %36 : vector<8x128xf32> to vector<8x128xbf16>
    %cst_11 = arith.constant dense<0.000000e+00> : vector<8x128xf32>
    %41 = tpu.matmul %40, %37, %cst_11 {dimension_numbers = #tpu.dot_dimension_numbers<[1], [0], [0], [1], [0, 0, 1, 1], [], []>} : vector<8x128xbf16>, vector<128x128xbf16>, vector<8x128xf32> -> vector<8x128xf32>
    %42 = vector.broadcast %39 : vector<1x128xf32> to vector<8x128xf32>
    %43 = arith.addf %41, %42 : vector<8x128xf32>
    %cst_12 = arith.constant 0.000000e+00 : f32
    %44 = vector.broadcast %cst_12 : f32 to vector<8x128xf32>
    %45 = arith.maximumf %43, %44 : vector<8x128xf32>
    %c288 = arith.constant 288 : index
    %c0_13 = arith.constant 0 : index
    %46 = vector.load %arg3[%c288, %c0_13] : memref<432x128xbf16, #tpu.memory_space<vmem>>, vector<128x128xbf16>
    %c416 = arith.constant 416 : index
    %c0_14 = arith.constant 0 : index
    %47 = vector.load %arg3[%c416, %c0_14] : memref<432x128xbf16, #tpu.memory_space<vmem>>, vector<1x128xbf16>
    %48 = arith.extf %47 : vector<1x128xbf16> to vector<1x128xf32>
    %49 = arith.truncf %45 : vector<8x128xf32> to vector<8x128xbf16>
    %cst_15 = arith.constant dense<0.000000e+00> : vector<8x128xf32>
    %50 = tpu.matmul %49, %46, %cst_15 {dimension_numbers = #tpu.dot_dimension_numbers<[1], [0], [0], [1], [0, 0, 1, 1], [], []>} : vector<8x128xbf16>, vector<128x128xbf16>, vector<8x128xf32> -> vector<8x128xf32>
    %51 = vector.broadcast %48 : vector<1x128xf32> to vector<8x128xf32>
    %52 = arith.addf %50, %51 : vector<8x128xf32>
    %53 = arith.mulf %52, %52 : vector<8x128xf32>
    %cst_16 = arith.constant dense<0.000000e+00> : vector<8xf32>
    %54 = vector.multi_reduction <add>, %53, %cst_16 [1] : vector<8x128xf32> to vector<8xf32>
    %55 = vector.shape_cast %54 : vector<8xf32> to vector<8x1xf32>
    %cst_17 = arith.constant 1.000000e-24 : f32
    %56 = vector.broadcast %cst_17 : f32 to vector<8x1xf32>
    %57 = arith.maximumf %55, %56 : vector<8x1xf32>
    %58 = math.rsqrt %57 : vector<8x1xf32>
    %59 = vector.broadcast %58 : vector<8x1xf32> to vector<8x128xf32>
    %60 = arith.mulf %52, %59 : vector<8x128xf32>
    %c0_18 = arith.constant 0 : index
    %c0_19 = arith.constant 0 : index
    %61 = vector.load %arg4[%c0_18, %c0_19] : memref<8x128xf32, #tpu.memory_space<vmem>>, vector<8x128xf32>
    tpu.vector_store %arg4[%c0_18, %c0_19], %60 {strides = array<i32>} : memref<8x128xf32, #tpu.memory_space<vmem>>, vector<8x128xf32>,
    return
  }
  func.func @transform_0(%arg0: i32) -> (i32, i32) {
    %c0_i32 = arith.constant 0 : i32
    %c0_i32_0 = arith.constant 0 : i32
    return %arg0, %c0_i32 : i32, i32
  }
  func.func @transform_1(%arg0: i32) -> (i32, i32) {
    %c0_i32 = arith.constant 0 : i32
    %c0_i32_0 = arith.constant 0 : i32
    %c0_i32_1 = arith.constant 0 : i32
    return %c0_i32, %c0_i32_0 : i32, i32
  }
  func.func @transform_2(%arg0: i32) -> (i32, i32) {
    %c0_i32 = arith.constant 0 : i32
    %c0_i32_0 = arith.constant 0 : i32
    %c0_i32_1 = arith.constant 0 : i32
    return %c0_i32, %c0_i32_0 : i32, i32
  }
  func.func @transform_3(%arg0: i32) -> (i32, i32) {
    %c0_i32 = arith.constant 0 : i32
    %c0_i32_0 = arith.constant 0 : i32
    return %arg0, %c0_i32 : i32, i32
  }
}

module attributes {stable_mosaic.version = 11 : i64} {
  func.func @_tower_fused_kernel(%arg0: i32, %arg1: memref<8x128xf32, #tpu.memory_space<vmem>>, %arg2: memref<128x128xbf16, #tpu.memory_space<vmem>>, %arg3: memref<432x128xbf16, #tpu.memory_space<vmem>>, %arg4: memref<8x128xf32, #tpu.memory_space<vmem>>) attributes {dimension_semantics = [#tpu.dimension_semantics<parallel>], iteration_bounds = array<i64: 1>, scalar_prefetch = 0 : i64, scratch_operands = 0 : i64, tpu.core_type = #tpu.core_type<tc>, window_params = [{transform_indices = @transform_0, window_bounds = array<i64: 8, 128>}, {pipeline_mode = #tpu.pipeline_mode<synchronous>, transform_indices = @transform_1, window_bounds = array<i64: 128, 128>}, {pipeline_mode = #tpu.pipeline_mode<synchronous>, transform_indices = @transform_2, window_bounds = array<i64: 432, 128>}, {transform_indices = @transform_3, window_bounds = array<i64: 8, 128>}]} {
    %c0 = arith.constant 0 : index
    %c0_0 = arith.constant 0 : index
    %0 = vector.load %arg1[%c0, %c0_0] : memref<8x128xf32, #tpu.memory_space<vmem>>, vector<8x128xf32>
    %1 = tpu.iota {dimensions = array<i32: 1>} : vector<8x128xi32>
    %cst = arith.constant 0.000000e+00 : f32
    %2 = vector.broadcast %cst : f32 to vector<8x128xf32>
    %3 = vector.extract_strided_slice %0 {offsets = [0, 32], sizes = [8, 1], strides = [1, 1]} : vector<8x128xf32> to vector<8x1xf32>
    %4 = arith.fptosi %3 : vector<8x1xf32> to vector<8x1xi32>
    %5 = vector.broadcast %4 : vector<8x1xi32> to vector<8x128xi32>
    %6 = arith.cmpi eq, %5, %1 : vector<8x128xi32>
    %7 = arith.extui %6 : vector<8x128xi1> to vector<8x128xi32>
    %8 = arith.sitofp %7 : vector<8x128xi32> to vector<8x128xf32>
    %9 = arith.addf %2, %8 : vector<8x128xf32>
    %10 = vector.extract_strided_slice %0 {offsets = [0, 33], sizes = [8, 1], strides = [1, 1]} : vector<8x128xf32> to vector<8x1xf32>
    %11 = arith.fptosi %10 : vector<8x1xf32> to vector<8x1xi32>
    %12 = vector.broadcast %11 : vector<8x1xi32> to vector<8x128xi32>
    %13 = arith.cmpi eq, %12, %1 : vector<8x128xi32>
    %14 = arith.extui %13 : vector<8x128xi1> to vector<8x128xi32>
    %15 = arith.sitofp %14 : vector<8x128xi32> to vector<8x128xf32>
    %16 = arith.addf %9, %15 : vector<8x128xf32>
    %17 = vector.extract_strided_slice %0 {offsets = [0, 34], sizes = [8, 1], strides = [1, 1]} : vector<8x128xf32> to vector<8x1xf32>
    %18 = arith.fptosi %17 : vector<8x1xf32> to vector<8x1xi32>
    %19 = vector.broadcast %18 : vector<8x1xi32> to vector<8x128xi32>
    %20 = arith.cmpi eq, %19, %1 : vector<8x128xi32>
    %21 = arith.extui %20 : vector<8x128xi1> to vector<8x128xi32>
    %22 = arith.sitofp %21 : vector<8x128xi32> to vector<8x128xf32>
    %23 = arith.addf %16, %22 : vector<8x128xf32>
    %24 = arith.truncf %23 : vector<8x128xf32> to vector<8x128xbf16>
    %c0_1 = arith.constant 0 : index
    %c0_2 = arith.constant 0 : index
    %25 = vector.load %arg2[%c0_1, %c0_2] : memref<128x128xbf16, #tpu.memory_space<vmem>>, vector<128x128xbf16>
    %cst_3 = arith.constant dense<0.000000e+00> : vector<8x128xf32>
    %26 = tpu.matmul %24, %25, %cst_3 {dimension_numbers = #tpu.dot_dimension_numbers<[1], [0], [0], [1], [0, 0, 1, 1], [], []>} : vector<8x128xbf16>, vector<128x128xbf16>, vector<8x128xf32> -> vector<8x128xf32>
    %27 = arith.addf %26, %0 : vector<8x128xf32>
    %c0_4 = arith.constant 0 : index
    %c0_5 = arith.constant 0 : index
    %28 = vector.load %arg3[%c0_4, %c0_5] : memref<432x128xbf16, #tpu.memory_space<vmem>>, vector<128x128xbf16>
    %c128 = arith.constant 128 : index
    %c0_6 = arith.constant 0 : index
    %29 = vector.load %arg3[%c128, %c0_6] : memref<432x128xbf16, #tpu.memory_space<vmem>>, vector<1x128xbf16>
    %30 = arith.extf %29 : vector<1x128xbf16> to vector<1x128xf32>
    %31 = arith.truncf %27 : vector<8x128xf32> to vector<8x128xbf16>
    %cst_7 = arith.constant dense<0.000000e+00> : vector<8x128xf32>
    %32 = tpu.matmul %31, %28, %cst_7 {dimension_numbers = #tpu.dot_dimension_numbers<[1], [0], [0], [1], [0, 0, 1, 1], [], []>} : vector<8x128xbf16>, vector<128x128xbf16>, vector<8x128xf32> -> vector<8x128xf32>
    %33 = vector.broadcast %30 : vector<1x128xf32> to vector<8x128xf32>
    %34 = arith.addf %32, %33 : vector<8x128xf32>
    %cst_8 = arith.constant 0.000000e+00 : f32
    %35 = vector.broadcast %cst_8 : f32 to vector<8x128xf32>
    %36 = arith.maximumf %34, %35 : vector<8x128xf32>
    %c144 = arith.constant 144 : index
    %c0_9 = arith.constant 0 : index
    %37 = vector.load %arg3[%c144, %c0_9] : memref<432x128xbf16, #tpu.memory_space<vmem>>, vector<128x128xbf16>
    %c272 = arith.constant 272 : index
    %c0_10 = arith.constant 0 : index
    %38 = vector.load %arg3[%c272, %c0_10] : memref<432x128xbf16, #tpu.memory_space<vmem>>, vector<1x128xbf16>
    %39 = arith.extf %38 : vector<1x128xbf16> to vector<1x128xf32>
    %40 = arith.truncf %36 : vector<8x128xf32> to vector<8x128xbf16>
    %cst_11 = arith.constant dense<0.000000e+00> : vector<8x128xf32>
    %41 = tpu.matmul %40, %37, %cst_11 {dimension_numbers = #tpu.dot_dimension_numbers<[1], [0], [0], [1], [0, 0, 1, 1], [], []>} : vector<8x128xbf16>, vector<128x128xbf16>, vector<8x128xf32> -> vector<8x128xf32>
    %42 = vector.broadcast %39 : vector<1x128xf32> to vector<8x128xf32>
    %43 = arith.addf %41, %42 : vector<8x128xf32>
    %cst_12 = arith.constant 0.000000e+00 : f32
    %44 = vector.broadcast %cst_12 : f32 to vector<8x128xf32>
    %45 = arith.maximumf %43, %44 : vector<8x128xf32>
    %c288 = arith.constant 288 : index
    %c0_13 = arith.constant 0 : index
    %46 = vector.load %arg3[%c288, %c0_13] : memref<432x128xbf16, #tpu.memory_space<vmem>>, vector<128x128xbf16>
    %c416 = arith.constant 416 : index
    %c0_14 = arith.constant 0 : index
    %47 = vector.load %arg3[%c416, %c0_14] : memref<432x128xbf16, #tpu.memory_space<vmem>>, vector<1x128xbf16>
    %48 = arith.extf %47 : vector<1x128xbf16> to vector<1x128xf32>
    %49 = arith.truncf %45 : vector<8x128xf32> to vector<8x128xbf16>
    %cst_15 = arith.constant dense<0.000000e+00> : vector<8x128xf32>
    %50 = tpu.matmul %49, %46, %cst_15 {dimension_numbers = #tpu.dot_dimension_numbers<[1], [0], [0], [1], [0, 0, 1, 1], [], []>} : vector<8x128xbf16>, vector<128x128xbf16>, vector<8x128xf32> -> vector<8x128xf32>
    %51 = vector.broadcast %48 : vector<1x128xf32> to vector<8x128xf32>
    %52 = arith.addf %50, %51 : vector<8x128xf32>
    %53 = arith.mulf %52, %52 : vector<8x128xf32>
    %cst_16 = arith.constant dense<0.000000e+00> : vector<8xf32>
    %54 = vector.multi_reduction <add>, %53, %cst_16 [1] : vector<8x128xf32> to vector<8xf32>
    %55 = vector.shape_cast %54 : vector<8xf32> to vector<8x1xf32>
    %cst_17 = arith.constant 1.000000e-24 : f32
    %56 = vector.broadcast %cst_17 : f32 to vector<8x1xf32>
    %57 = arith.maximumf %55, %56 : vector<8x1xf32>
    %58 = math.rsqrt %57 : vector<8x1xf32>
    %59 = vector.broadcast %58 : vector<8x1xf32> to vector<8x128xf32>
    %60 = arith.mulf %52, %59 : vector<8x128xf32>
    %c0_18 = arith.constant 0 : index
    %c0_19 = arith.constant 0 : index
    %61 = vector.load %arg4[%c0_18, %c0_19] : memref<8x128xf32, #tpu.memory_space<vmem>>, vector<8x128xf32>
    tpu.vector_store %arg4[%c0_18, %c0_19], %60 {strides = array<i32>} : memref<8x128xf32, #tpu.memory_space<vmem>>, vector<8x128xf32>,
    return
  }
  func.func @transform_0(%arg0: i32) -> (i32, i32) {
    %c0_i32 = arith.constant 0 : i32
    %c0_i32_0 = arith.constant 0 : i32
    return %arg0, %c0_i32 : i32, i32
  }
  func.func @transform_1(%arg0: i32) -> (i32, i32) {
    %c0_i32 = arith.constant 0 : i32
    %c0_i32_0 = arith.constant 0 : i32
    %c0_i32_1 = arith.constant 0 : i32
    return %c0_i32, %c0_i32_0 : i32, i32
  }
  func.func @transform_2(%arg0: i32) -> (i32, i32) {
    %c0_i32 = arith.constant 0 : i32
    %c0_i32_0 = arith.constant 0 : i32
    %c0_i32_1 = arith.constant 0 : i32
    return %c0_i32, %c0_i32_0 : i32, i32
  }
  func.func @transform_3(%arg0: i32) -> (i32, i32) {
    %c0_i32 = arith.constant 0 : i32
    %c0_i32_0 = arith.constant 0 : i32
    return %arg0, %c0_i32 : i32, i32
  }
}

</mosaic_0001>

<bundles_post_ra>
// kernel: tpu_custom_call.1
= control target key start
LH: loop header
LB: loop body
LE: loop exit
PB: predicated region body
PF: predicated region fallthrough
CT: control target
= control target key end

     0   :  { %8 = vsyncpa [#allocation3], 0  ;;  %s973_s0 = inlined_call_operand.hbm [shape: f32[8,128], index: 0, kind: input, shape index: {}]   ;;  %s974_s1 = inlined_call_operand.hbm [shape: bf16[128,128], index: 1, kind: input, shape index: {}]   ;;  %s975_s2 = inlined_call_operand.hbm [shape: bf16[432,128], index: 2, kind: input, shape index: {}]   ;;  %s976_s3 = inlined_call_operand.hbm [shape: f32[8,128], index: 3, kind: output, shape index: {}]  }
   0x1   :  { %9 = vsyncpa [#allocation6], 0 }
   0x2   :  { %10 = vsyncpa [#allocation4], 0  ;;  %s839_s12 = smov [#allocation5]   ;;  %s745_s16 = scalar_lea.hbm %s974_s1, 1024 }
   0x3   :  { %s26_s13 = sshll.u32 %s839_s12, 4  ;;  %p746_p0 = scmp.ne.s32.totalorder %s974_s1, %s745_s16  ;;  %s27_s13 = int_to_ptr.vmem [resolvable:$true] %s26_s13 }
   0x4   :  { %p749_p1 = scmp.lt.u32.totalorder %s745_s16, %s974_s1 }
   0x6   :  { %p751_p2 = pnand %p749_p1, %p746_p0 }
   0x8   :  { %754 = shalt.err (!%p751_p2)
}
   0x9   :  { %s755_s21 = scalar_lea.vmem %s27_s13, 1024  ;;  %p760_p4 = scmp.lt.s32.totalorder %s27_s13, %s27_s13 }
   0xa   :  { %p756_p3 = scmp.ne.s32.totalorder %s27_s13, %s755_s21  ;;  %p761_p5 = scmp.lt.s32.totalorder %s755_s21, %s755_s21 }
   0xc   :  { %p762_p6 = por %p761_p5, %p760_p4 }
   0xe   :  { %p763_p7 = pnand %p762_p6, %p756_p3 }
  0x10   :  { %766 = shalt.err (!%p763_p7)
}
  0x11   :  { %s840_s22 = smov 64   ;;  %s841_s23 = smov 4  }
  0x12   :  { %32 = dma.hbm_to_vmem [thread:$0]  %s974_s1, 1024, %s27_s13, [#allocation6], %s840_s22, %s840_s22, %s841_s23  }
  0x13   :  { %s842_s26 = smov [#allocation2]   ;;  %s843_s28 = smov [#allocation7]  }
  0x14   :  { %s17_s27 = sshll.u32 %s842_s26, 4  ;;  %s38_s29 = sshll.u32 %s843_s28, 4  ;;  %s18_s27 = int_to_ptr.vmem [resolvable:$true] %s17_s27  ;;  %s39_s29 = int_to_ptr.vmem [resolvable:$true] %s38_s29 }
  0x15   :  { %s767_s5 = scalar_lea.hbm %s973_s0, 128 }
  0x16   :  { %p768_p8 = scmp.ne.s32.totalorder %s973_s0, %s767_s5  ;;  %p771_p9 = scmp.lt.u32.totalorder %s767_s5, %s973_s0 }
  0x18   :  { %p773_p10 = pnand %p771_p9, %p768_p8 }
  0x1a   :  { %776 = shalt.err (!%p773_p10)
}
  0x1b   :  { %s777_s1 = scalar_lea.vmem %s18_s27, 128  ;;  %p782_p12 = scmp.lt.s32.totalorder %s18_s27, %s18_s27 }
  0x1c   :  { %p778_p11 = scmp.ne.s32.totalorder %s18_s27, %s777_s1  ;;  %p783_p13 = scmp.lt.s32.totalorder %s777_s1, %s777_s1 }
  0x1e   :  { %p784_p0 = por %p783_p13, %p782_p12 }
  0x20   :  { %p785_p1 = pnand %p784_p0, %p778_p11 }
  0x22   :  { %788 = shalt.err (!%p785_p1)
}
  0x23   :  { %20 = dma.hbm_to_vmem [thread:$0]  %s973_s0, 128, %s18_s27, [#allocation3]  }
  0x24   :  { %s789_s14 = scalar_lea.hbm %s975_s2, 3456 }
  0x25   :  { %p790_p2 = scmp.ne.s32.totalorder %s975_s2, %s789_s14  ;;  %p793_p3 = scmp.lt.u32.totalorder %s789_s14, %s975_s2 }
  0x27   :  { %p795_p4 = pnand %p793_p3, %p790_p2 }
  0x29   :  { %798 = shalt.err (!%p795_p4)
}
  0x2a   :  { %s799_s19 = scalar_lea.vmem %s39_s29, 3456  ;;  %p804_p6 = scmp.lt.s32.totalorder %s39_s29, %s39_s29 }
  0x2b   :  { %p800_p5 = scmp.ne.s32.totalorder %s39_s29, %s799_s19  ;;  %p805_p7 = scmp.lt.s32.totalorder %s799_s19, %s799_s19 }
  0x2d   :  { %p806_p8 = por %p805_p7, %p804_p6 }
  0x2f   :  { %p807_p9 = pnand %p806_p8, %p800_p5 }
  0x31   :  { %810 = shalt.err (!%p807_p9)
}
  0x32   :  { %44 = dma.hbm_to_vmem [thread:$0]  %s975_s2, 3456, %s39_s29, [#allocation6], %s840_s22, %s840_s22, %s841_s23  }
  0x33   :  { %833 = dma.done.wait [#allocation3], 128  }
  0x34   :  { %834 = vsyncadd [#allocation3], 4294967168 }
  0x35   :  { %835 = dma.done.wait [#allocation6], 4480  }
  0x36   :  { %836 = vsyncadd [#allocation6], 4294962816  ;;  %v844_v0 = vmov 32   ;;  %v845_v1 = vmov 34   ;;  %v846_v2 = vmov 0.0   ;;  %v914_v3 = vld [vmem:[#allocation2] sm:$0xff]  ;;  %v56_v22 = vlaneseq }
  0x37   :  { %707 = vset.pattern.permute.xlu0 %v844_v0  ;;  %709 = vset.pattern.permute.xlu1 %v845_v1  ;;  %v694_v4 = vtrunc.f32 %v914_v3  ;;  %v711_v5 = vld [vmem:[#allocation5] sm:$0xff]   ;;  %v712_v7 = vld [vmem:[#allocation5 + $0x8] sm:$0xff]   ;;  %v713_v8 = vld [vmem:[#allocation5 + $0x10] sm:$0xff]   ;;  %v847_v9 = vmov 33   ;;  %vm848_vm0 = vmmov 0   ;;  %s849_s2 = smov [#allocation8]  }
  0x38   :  { %614 = vmatprep.subr.bf16.mxu0 %v846_v2  ;;  %634 = vmatprep.subr.bf16.mxu1 %v846_v2  ;;  %v714_v10 = vld [vmem:[#allocation5 + $0x18] sm:$0xff]   ;;  %v715_v11 = vld [vmem:[#allocation5 + $0x20] sm:$0xff]   ;;  %v716_v13 = vld [vmem:[#allocation5 + $0x28] sm:$0xff]   ;;  %v57_v23 = vand.u32 127, %v56_v22  ;;  %v205_v54 = vshrl.u32 %v56_v22, 7  ;;  %s533_s21 = sshll.u32 %s849_s2, 4  ;;  %s534_s21 = int_to_ptr.vmem [resolvable:$true] %s533_s21 }
  0x39   :  { %v695_v6 = vcvt.f32.s32 %v694_v4  ;;  %615 = vmatpush3.bf16.msra.mxu0 %v711_v5  ;;  %630 = vmatprep.mubr.msk.bf16.mxu0 %vm848_vm0, %v846_v2  ;;  %v719_v12 = vld [vmem:[#allocation7] sm:$0xff]   ;;  %v720_v14 = vld [vmem:[#allocation7 + $0x8] sm:$0xff]   ;;  %v717_v15 = vld [vmem:[#allocation5 + $0x30] sm:$0xff]   ;;  %s811_s22 = scalar_lea.vmem %s534_s21, 128  ;;  %p816_p11 = scmp.lt.s32.totalorder %s534_s21, %s534_s21 }
  0x3a   :  { %616 = vmatprep.subr.bf16.mxu0 %v846_v2  ;;  %650 = vmatprep.mubr.msk.bf16.mxu1 %vm848_vm0, %v846_v2  ;;  %v721_v16 = vld [vmem:[#allocation7 + $0x10] sm:$0xff]   ;;  %v718_v17 = vld [vmem:[#allocation5 + $0x38] sm:$0xff]   ;;  %v723_v19 = vld [vmem:[#allocation7 + $0x20] sm:$0xff]   ;;  %v206_v57 = vsub.s32 0, %v205_v54  ;;  %p812_p10 = scmp.ne.s32.totalorder %s534_s21, %s811_s22  ;;  %p817_p12 = scmp.lt.s32.totalorder %s811_s22, %s811_s22 }
  0x3b   :  { %60 = vperm.xlu0 %707, %v695_v6   ;;  %74 = vperm.xlu1 %709, %v695_v6   ;;  %v722_v18 = vld [vmem:[#allocation7 + $0x18] sm:$0xff]   ;;  %v724_v20 = vld [vmem:[#allocation7 + $0x28] sm:$0xff]   ;;  %v725_v21 = vld [vmem:[#allocation7 + $0x30] sm:$0xff]  }
  0x3c   :  { %635 = vmatpush3.bf16.msra.mxu1 %v719_v12  ;;  %v726_v33 = vld [vmem:[#allocation7 + $0x38] sm:$0xff]   ;;  %v727_v34 = vld [vmem:[#allocation7 + $0x48] sm:$0xff]   ;;  %v728_v35 = vld [vmem:[#allocation7 + $0x50] sm:$0xff]   ;;  %p818_p13 = por %p817_p12, %p816_p11 }
  0x3d   :  { %617 = vmatpush3.bf16.msra.mxu0 %v712_v7  ;;  %636 = vmatprep.subr.bf16.mxu1 %v846_v2  ;;  %v729_v36 = vld [vmem:[#allocation7 + $0x58] sm:$0xff]   ;;  %v730_v37 = vld [vmem:[#allocation7 + $0x60] sm:$0xff]   ;;  %v731_v38 = vld [vmem:[#allocation7 + $0x68] sm:$0xff]  }
  0x3e   :  { %618 = vmatprep.subr.bf16.mxu0 %v846_v2  ;;  %v732_v39 = vld [vmem:[#allocation7 + $0x70] sm:$0xff]   ;;  %v733_v46 = vld [vmem:[#allocation7 + $0x78] sm:$0xff]   ;;  %v734_v47 = vld [vmem:[#allocation7 + $0x80] sm:$0xff]   ;;  %p819_p0 = pnand %p818_p13, %p812_p10 }
  0x3f   :  { %708 = vset.pattern.permute.xlu0 %v847_v9  ;;  %v735_v48 = vld [vmem:[#allocation7 + $0x90] sm:$0xff]   ;;  %v736_v49 = vld [vmem:[#allocation7 + $0x98] sm:$0xff]   ;;  %v737_v50 = vld [vmem:[#allocation7 + $0xa0] sm:$0xff]  }
  0x40   :  { %67 = vperm.xlu0 %708, %v695_v6   ;;  %637 = vmatpush3.bf16.msra.mxu1 %v720_v14  ;;  %v738_v51 = vld [vmem:[#allocation7 + $0xa8] sm:$0xff]   ;;  %v739_v52 = vld [vmem:[#allocation7 + $0xb0] sm:$0xff]   ;;  %v740_v53 = vld [vmem:[#allocation7 + $0xb8] sm:$0xff]  }
  0x41   :  { %619 = vmatpush3.bf16.msra.mxu0 %v713_v8  ;;  %638 = vmatprep.subr.bf16.mxu1 %v846_v2  ;;  %v201_v55 = vld [vmem:[#allocation7 + $0x40] sm:$0x1]  ;;  %v742_v4 = vld [vmem:[#allocation7 + $0xc8] sm:$0xff]  }
  0x42   :  { %620 = vmatprep.subr.bf16.mxu0 %v846_v2  ;;  %v202_v56 = vunpack.c.l.bf16 %v201_v55  ;;  %v313_v5 = vld [vmem:[#allocation7 + $0x88] sm:$0x1] }
  0x43   :  { %v314_v6 = vunpack.c.l.bf16 %v313_v5 }
  0x44   :  { %710 = vset.pattern.permute.xlu0 %v845_v1  ;;  %639 = vmatpush3.bf16.msra.mxu1 %v721_v16  ;;  %v207_v58 = vrot.slane %v202_v56, %v206_v57 }
  0x45   :  { %621 = vmatpush3.bf16.msra.mxu0 %v714_v10  ;;  %640 = vmatprep.subr.bf16.mxu1 %v846_v2  ;;  %v319_v7 = vrot.slane %v314_v6, %v206_v57 }
  0x46   :  { %622 = vmatprep.subr.bf16.mxu0 %v846_v2 }
  0x48   :  { %641 = vmatpush3.bf16.msra.mxu1 %v722_v18 }
  0x49   :  { %623 = vmatpush3.bf16.msra.mxu0 %v715_v11  ;;  %642 = vmatprep.subr.bf16.mxu1 %v846_v2 }
  0x4a   :  { %624 = vmatprep.subr.bf16.mxu0 %v846_v2 }
  0x4c   :  { %643 = vmatpush3.bf16.msra.mxu1 %v723_v19 }
  0x4d   :  { %625 = vmatpush3.bf16.msra.mxu0 %v716_v13  ;;  %644 = vmatprep.subr.bf16.mxu1 %v846_v2 }
  0x4e   :  { %626 = vmatprep.subr.bf16.mxu0 %v846_v2 }
  0x50   :  { %645 = vmatpush3.bf16.msra.mxu1 %v724_v20 }
  0x51   :  { %627 = vmatpush3.bf16.msra.mxu0 %v717_v15  ;;  %646 = vmatprep.subr.bf16.mxu1 %v846_v2  ;;  %v425_v15 = vld [vmem:[#allocation7 + $0xd0] sm:$0x1] }
  0x52   :  { %628 = vmatprep.subr.bf16.mxu0 %v846_v2  ;;  %v426_v16 = vunpack.c.l.bf16 %v425_v15 }
  0x54   :  { %647 = vmatpush3.bf16.msra.mxu1 %v725_v21 }
  0x55   :  { %629 = vmatpush3.bf16.msra.mxu0 %v718_v17  ;;  %648 = vmatprep.subr.bf16.mxu1 %v846_v2  ;;  %v431_v17 = vrot.slane %v426_v16, %v206_v57 }
  0x56   :  { %654 = vmatprep.subr.bf16.mxu0 %v846_v2 }
  0x58   :  { %649 = vmatpush3.bf16.msra.mxu1 %v726_v33 }
  0x59   :  { %674 = vmatprep.subr.bf16.mxu1 %v846_v2 }
  0xba   :  { %v61_v24 = vpop.permute.xlu0 %60  ;;  %v75_v25 = vpop.permute.xlu1 %74 }
  0xbb   :  { %vm62_vm1 = vcmp.eq.s32.totalorder %v61_v24, %v57_v23  ;;  %vm76_vm2 = vcmp.eq.s32.totalorder %v75_v25, %v57_v23 }
  0xbc   :  { %v543_v27 = vsel %vm62_vm1, 1.0, %v846_v2  ;;  %v545_v29 = vsel %vm76_vm2, 1.0, %v846_v2 }
  0xbf   :  { %v68_v26 = vpop.permute.xlu0 %67 }
  0xc0   :  { %vm69_vm3 = vcmp.eq.s32.totalorder %v68_v26, %v57_v23 }
  0xc1   :  { %v544_v28 = vsel %vm69_vm3, 1.0, %v846_v2 }
  0xc2   :  { %v72_v30 = vadd.f32 %v544_v28, %v543_v27 }
  0xc4   :  { %v79_v31 = vadd.f32 %v545_v29, %v72_v30 }
  0xc6   :  { %v80_v32 = vpack.c.bf16 %v79_v31, %v79_v31 }
  0xc8   :  { %631 = vmatmul.mubr.bf16.vlgmr.msra.gmra.mrb[0].mxu0 %v80_v32 }
  0xc9   :  { %670 = vmatprep.mubr.msk.bf16.mxu0 %vm848_vm0, %v846_v2  ;;  %655 = vmatpush3.bf16.msra.mxu0 %v727_v34 }
  0xca   :  { %656 = vmatprep.subr.bf16.mxu0 %v846_v2 }
  0xcd   :  { %657 = vmatpush3.bf16.msra.mxu0 %v728_v35 }
  0xce   :  { %658 = vmatprep.subr.bf16.mxu0 %v846_v2 }
  0xd1   :  { %659 = vmatpush3.bf16.msra.mxu0 %v729_v36 }
  0xd2   :  { %660 = vmatprep.subr.bf16.mxu0 %v846_v2 }
  0xd5   :  { %661 = vmatpush3.bf16.msra.mxu0 %v730_v37 }
  0xd6   :  { %662 = vmatprep.subr.bf16.mxu0 %v846_v2 }
  0xd9   :  { %663 = vmatpush3.bf16.msra.mxu0 %v731_v38 }
  0xda   :  { %664 = vmatprep.subr.bf16.mxu0 %v846_v2 }
  0xdd   :  { %665 = vmatpush3.bf16.msra.mxu0 %v732_v39 }
  0xde   :  { %666 = vmatprep.subr.bf16.mxu0 %v846_v2 }
  0xe1   :  { %667 = vmatpush3.bf16.msra.mxu0 %v733_v46 }
  0xe2   :  { %668 = vmatprep.subr.bf16.mxu0 %v846_v2 }
  0xe5   :  { %669 = vmatpush3.bf16.msra.mxu0 %v734_v47 }
 0x19b   :  { %v179_v40 = vpop.f32.mrb[0].mxu0 }
 0x19c   :  { %v180_v41 = vadd.f32 %v179_v40, %v914_v3  ;;  %v632_v42 = vpop.f32.mrb[1].mxu0  ;;  %v741_v3 = vld [vmem:[#allocation7 + $0xc0] sm:$0xff]  }
 0x19d   :  { %v182_v43 = vpop.f32.mrb[2].mxu0 }
 0x19e   :  { %v203_v44 = vpack.c.bf16 %v180_v41, %v180_v41  ;;  %v633_v45 = vpop.f32.mrb[3].mxu0 }
 0x1a0   :  { %651 = vmatmul.mubr.bf16.vlgmr.msra.gmra.mrb[0].mxu1 %v203_v44 }
 0x1a1   :  { %690 = vmatprep.mubr.msk.bf16.mxu1 %vm848_vm0, %v846_v2  ;;  %675 = vmatpush3.bf16.msra.mxu1 %v735_v48 }
 0x1a2   :  { %676 = vmatprep.subr.bf16.mxu1 %v846_v2 }
 0x1a5   :  { %677 = vmatpush3.bf16.msra.mxu1 %v736_v49 }
 0x1a6   :  { %678 = vmatprep.subr.bf16.mxu1 %v846_v2 }
 0x1a9   :  { %679 = vmatpush3.bf16.msra.mxu1 %v737_v50 }
 0x1aa   :  { %680 = vmatprep.subr.bf16.mxu1 %v846_v2 }
 0x1ad   :  { %681 = vmatpush3.bf16.msra.mxu1 %v738_v51 }
 0x1ae   :  { %682 = vmatprep.subr.bf16.mxu1 %v846_v2 }
 0x1b1   :  { %683 = vmatpush3.bf16.msra.mxu1 %v739_v52 }
 0x1b2   :  { %684 = vmatprep.subr.bf16.mxu1 %v846_v2 }
 0x1b5   :  { %685 = vmatpush3.bf16.msra.mxu1 %v740_v53 }
 0x1b6   :  { %686 = vmatprep.subr.bf16.mxu1 %v846_v2 }
 0x1b9   :  { %687 = vmatpush3.bf16.msra.mxu1 %v741_v3 }
 0x1ba   :  { %688 = vmatprep.subr.bf16.mxu1 %v846_v2 }
 0x1bd   :  { %689 = vmatpush3.bf16.msra.mxu1 %v742_v4 }
 0x273   :  { %v290_v59 = vpop.f32.mrb[0].mxu1 }
 0x274   :  { %v291_v60 = vadd.f32 %v290_v59, %v207_v58  ;;  %v652_v61 = vpop.f32.mrb[1].mxu1 }
 0x275   :  { %v293_v62 = vpop.f32.mrb[2].mxu1 }
 0x276   :  { %v296_v63 = vmax.f32 %v291_v60, 0.0  ;;  %v653_v0 = vpop.f32.mrb[3].mxu1 }
 0x278   :  { %v315_v1 = vpack.c.bf16 %v296_v63, %v296_v63 }
 0x27a   :  { %671 = vmatmul.mubr.bf16.vlgmr.msra.gmra.mrb[4].mxu0 %v315_v1 }
 0x34d   :  { %v402_v8 = vpop.f32.mrb[4].mxu0 }
 0x34e   :  { %v403_v9 = vadd.f32 %v402_v8, %v319_v7  ;;  %v672_v10 = vpop.f32.mrb[5].mxu0 }
 0x34f   :  { %v405_v11 = vpop.f32.mrb[6].mxu0 }
 0x350   :  { %v408_v12 = vmax.f32 %v403_v9, 0.0  ;;  %v673_v13 = vpop.f32.mrb[7].mxu0 }
 0x352   :  { %v427_v14 = vpack.c.bf16 %v408_v12, %v408_v12 }
 0x354   :  { %691 = vmatmul.mubr.bf16.vlgmr.msra.gmra.mrb[4].mxu1 %v427_v14 }
 0x427   :  { %v514_v18 = vpop.f32.mrb[4].mxu1 }
 0x428   :  { %v515_v19 = vadd.f32 %v514_v18, %v431_v17  ;;  %v692_v20 = vpop.f32.mrb[5].mxu1 }
 0x429   :  { %v517_v2 = vpop.f32.mrb[6].mxu1 }
 0x42a   :  { %v693_v21 = vpop.f32.mrb[7].mxu1  ;;  %v520_v22 = vmul.f32 %v515_v19, %v515_v19 }
 0x42c   :  { %521 = vadd.xlane.f32.xlu1 %v520_v22 }
 0x4b9   :  { %v522_v23 = vpop.xlane.xlu1 %521 }
 0x4ba   :  { %v523_v24 = vmax.f32 %v522_v23, 1e-24 }
 0x4bc   :  { %743 = vrsqrt.f32 %v523_v24 }
 0x4c6   :  { %v744_v25 = vpop.eup %743 }
 0x4c7   :  { %v525_v26 = vmul.f32 %v744_v25, %v515_v19 }
 0x4c9   :  { %526 = vst [vmem:[#allocation8] sm:$0xff] %v525_v26 }
 0x4ca   :  { %822 = shalt.err (!%p819_p0)
}
 0x4cb   :  { %s823_s25 = scalar_lea.hbm %s976_s3, 128 }
 0x4cc   :  { %p824_p1 = scmp.ne.s32.totalorder %s976_s3, %s823_s25  ;;  %p827_p2 = scmp.lt.u32.totalorder %s823_s25, %s976_s3 }
 0x4ce   :  { %p829_p3 = pnand %p827_p2, %p824_p1 }
 0x4d0   :  { %832 = shalt.err (!%p829_p3)
}
 0x4d1   :  { %536 = dma.vmem_to_hbm [thread:$0]  %s534_s21, 128, %s976_s3, [#allocation4]  }
 0x4d2   :  { %837 = dma.done.wait [#allocation4], 128  }
 0x4d3   :  { %838 = vsyncadd [#allocation4], 4294967168 }
 0x4d4   :  { %540 = vsyncpa [#allocation3], 1 }
 0x4d5   :  { %541 = vsyncpa [#allocation6], 1 }
 0x4d6   :  { %542 = vsyncpa [#allocation4], 1 }

// kernel: tpu_custom_call.1
= control target key start
LH: loop header
LB: loop body
LE: loop exit
PB: predicated region body
PF: predicated region fallthrough
CT: control target
= control target key end

     0   :  { %8 = vsyncpa [#allocation3], 0  ;;  %s973_s0 = inlined_call_operand.hbm [shape: f32[8,128], index: 0, kind: input, shape index: {}]   ;;  %s974_s1 = inlined_call_operand.hbm [shape: bf16[128,128], index: 1, kind: input, shape index: {}]   ;;  %s975_s2 = inlined_call_operand.hbm [shape: bf16[432,128], index: 2, kind: input, shape index: {}]   ;;  %s976_s3 = inlined_call_operand.hbm [shape: f32[8,128], index: 3, kind: output, shape index: {}]  }
   0x1   :  { %9 = vsyncpa [#allocation6], 0 }
   0x2   :  { %10 = vsyncpa [#allocation4], 0  ;;  %s839_s12 = smov [#allocation5]   ;;  %s745_s16 = scalar_lea.hbm %s974_s1, 1024 }
   0x3   :  { %s26_s13 = sshll.u32 %s839_s12, 4  ;;  %p746_p0 = scmp.ne.s32.totalorder %s974_s1, %s745_s16  ;;  %s27_s13 = int_to_ptr.vmem [resolvable:$true] %s26_s13 }
   0x4   :  { %p749_p1 = scmp.lt.u32.totalorder %s745_s16, %s974_s1 }
   0x6   :  { %p751_p2 = pnand %p749_p1, %p746_p0 }
   0x8   :  { %754 = shalt.err (!%p751_p2)
}
   0x9   :  { %s755_s21 = scalar_lea.vmem %s27_s13, 1024  ;;  %p760_p4 = scmp.lt.s32.totalorder %s27_s13, %s27_s13 }
   0xa   :  { %p756_p3 = scmp.ne.s32.totalorder %s27_s13, %s755_s21  ;;  %p761_p5 = scmp.lt.s32.totalorder %s755_s21, %s755_s21 }
   0xc   :  { %p762_p6 = por %p761_p5, %p760_p4 }
   0xe   :  { %p763_p7 = pnand %p762_p6, %p756_p3 }
  0x10   :  { %766 = shalt.err (!%p763_p7)
}
  0x11   :  { %s840_s22 = smov 64   ;;  %s841_s23 = smov 4  }
  0x12   :  { %32 = dma.hbm_to_vmem [thread:$0]  %s974_s1, 1024, %s27_s13, [#allocation6], %s840_s22, %s840_s22, %s841_s23  }
  0x13   :  { %s842_s26 = smov [#allocation2]   ;;  %s843_s28 = smov [#allocation7]  }
  0x14   :  { %s17_s27 = sshll.u32 %s842_s26, 4  ;;  %s38_s29 = sshll.u32 %s843_s28, 4  ;;  %s18_s27 = int_to_ptr.vmem [resolvable:$true] %s17_s27  ;;  %s39_s29 = int_to_ptr.vmem [resolvable:$true] %s38_s29 }
  0x15   :  { %s767_s5 = scalar_lea.hbm %s973_s0, 128 }
  0x16   :  { %p768_p8 = scmp.ne.s32.totalorder %s973_s0, %s767_s5  ;;  %p771_p9 = scmp.lt.u32.totalorder %s767_s5, %s973_s0 }
  0x18   :  { %p773_p10 = pnand %p771_p9, %p768_p8 }
  0x1a   :  { %776 = shalt.err (!%p773_p10)
}
  0x1b   :  { %s777_s1 = scalar_lea.vmem %s18_s27, 128  ;;  %p782_p12 = scmp.lt.s32.totalorder %s18_s27, %s18_s27 }
  0x1c   :  { %p778_p11 = scmp.ne.s32.totalorder %s18_s27, %s777_s1  ;;  %p783_p13 = scmp.lt.s32.totalorder %s777_s1, %s777_s1 }
  0x1e   :  { %p784_p0 = por %p783_p13, %p782_p12 }
  0x20   :  { %p785_p1 = pnand %p784_p0, %p778_p11 }
  0x22   :  { %788 = shalt.err (!%p785_p1)
}
  0x23   :  { %20 = dma.hbm_to_vmem [thread:$0]  %s973_s0, 128, %s18_s27, [#allocation3]  }
  0x24   :  { %s789_s14 = scalar_lea.hbm %s975_s2, 3456 }
  0x25   :  { %p790_p2 = scmp.ne.s32.totalorder %s975_s2, %s789_s14  ;;  %p793_p3 = scmp.lt.u32.totalorder %s789_s14, %s975_s2 }
  0x27   :  { %p795_p4 = pnand %p793_p3, %p790_p2 }
  0x29   :  { %798 = shalt.err (!%p795_p4)
}
  0x2a   :  { %s799_s19 = scalar_lea.vmem %s39_s29, 3456  ;;  %p804_p6 = scmp.lt.s32.totalorder %s39_s29, %s39_s29 }
  0x2b   :  { %p800_p5 = scmp.ne.s32.totalorder %s39_s29, %s799_s19  ;;  %p805_p7 = scmp.lt.s32.totalorder %s799_s19, %s799_s19 }
  0x2d   :  { %p806_p8 = por %p805_p7, %p804_p6 }
  0x2f   :  { %p807_p9 = pnand %p806_p8, %p800_p5 }
  0x31   :  { %810 = shalt.err (!%p807_p9)
}
  0x32   :  { %44 = dma.hbm_to_vmem [thread:$0]  %s975_s2, 3456, %s39_s29, [#allocation6], %s840_s22, %s840_s22, %s841_s23  }
  0x33   :  { %833 = dma.done.wait [#allocation3], 128  }
  0x34   :  { %834 = vsyncadd [#allocation3], 4294967168 }
  0x35   :  { %835 = dma.done.wait [#allocation6], 4480  }
  0x36   :  { %836 = vsyncadd [#allocation6], 4294962816  ;;  %v844_v0 = vmov 32   ;;  %v845_v1 = vmov 34   ;;  %v846_v2 = vmov 0.0   ;;  %v914_v3 = vld [vmem:[#allocation2] sm:$0xff]  ;;  %v56_v22 = vlaneseq }
  0x37   :  { %707 = vset.pattern.permute.xlu0 %v844_v0  ;;  %709 = vset.pattern.permute.xlu1 %v845_v1  ;;  %v694_v4 = vtrunc.f32 %v914_v3  ;;  %v711_v5 = vld [vmem:[#allocation5] sm:$0xff]   ;;  %v712_v7 = vld [vmem:[#allocation5 + $0x8] sm:$0xff]   ;;  %v713_v8 = vld [vmem:[#allocation5 + $0x10] sm:$0xff]   ;;  %v847_v9 = vmov 33   ;;  %vm848_vm0 = vmmov 0   ;;  %s849_s2 = smov [#allocation8]  }
  0x38   :  { %614 = vmatprep.subr.bf16.mxu0 %v846_v2  ;;  %634 = vmatprep.subr.bf16.mxu1 %v846_v2  ;;  %v714_v10 = vld [vmem:[#allocation5 + $0x18] sm:$0xff]   ;;  %v715_v11 = vld [vmem:[#allocation5 + $0x20] sm:$0xff]   ;;  %v716_v13 = vld [vmem:[#allocation5 + $0x28] sm:$0xff]   ;;  %v57_v23 = vand.u32 127, %v56_v22  ;;  %v205_v54 = vshrl.u32 %v56_v22, 7  ;;  %s533_s21 = sshll.u32 %s849_s2, 4  ;;  %s534_s21 = int_to_ptr.vmem [resolvable:$true] %s533_s21 }
  0x39   :  { %v695_v6 = vcvt.f32.s32 %v694_v4  ;;  %615 = vmatpush3.bf16.msra.mxu0 %v711_v5  ;;  %630 = vmatprep.mubr.msk.bf16.mxu0 %vm848_vm0, %v846_v2  ;;  %v719_v12 = vld [vmem:[#allocation7] sm:$0xff]   ;;  %v720_v14 = vld [vmem:[#allocation7 + $0x8] sm:$0xff]   ;;  %v717_v15 = vld [vmem:[#allocation5 + $0x30] sm:$0xff]   ;;  %s811_s22 = scalar_lea.vmem %s534_s21, 128  ;;  %p816_p11 = scmp.lt.s32.totalorder %s534_s21, %s534_s21 }
  0x3a   :  { %616 = vmatprep.subr.bf16.mxu0 %v846_v2  ;;  %650 = vmatprep.mubr.msk.bf16.mxu1 %vm848_vm0, %v846_v2  ;;  %v721_v16 = vld [vmem:[#allocation7 + $0x10] sm:$0xff]   ;;  %v718_v17 = vld [vmem:[#allocation5 + $0x38] sm:$0xff]   ;;  %v723_v19 = vld [vmem:[#allocation7 + $0x20] sm:$0xff]   ;;  %v206_v57 = vsub.s32 0, %v205_v54  ;;  %p812_p10 = scmp.ne.s32.totalorder %s534_s21, %s811_s22  ;;  %p817_p12 = scmp.lt.s32.totalorder %s811_s22, %s811_s22 }
  0x3b   :  { %60 = vperm.xlu0 %707, %v695_v6   ;;  %74 = vperm.xlu1 %709, %v695_v6   ;;  %v722_v18 = vld [vmem:[#allocation7 + $0x18] sm:$0xff]   ;;  %v724_v20 = vld [vmem:[#allocation7 + $0x28] sm:$0xff]   ;;  %v725_v21 = vld [vmem:[#allocation7 + $0x30] sm:$0xff]  }
  0x3c   :  { %635 = vmatpush3.bf16.msra.mxu1 %v719_v12  ;;  %v726_v33 = vld [vmem:[#allocation7 + $0x38] sm:$0xff]   ;;  %v727_v34 = vld [vmem:[#allocation7 + $0x48] sm:$0xff]   ;;  %v728_v35 = vld [vmem:[#allocation7 + $0x50] sm:$0xff]   ;;  %p818_p13 = por %p817_p12, %p816_p11 }
  0x3d   :  { %617 = vmatpush3.bf16.msra.mxu0 %v712_v7  ;;  %636 = vmatprep.subr.bf16.mxu1 %v846_v2  ;;  %v729_v36 = vld [vmem:[#allocation7 + $0x58] sm:$0xff]   ;;  %v730_v37 = vld [vmem:[#allocation7 + $0x60] sm:$0xff]   ;;  %v731_v38 = vld [vmem:[#allocation7 + $0x68] sm:$0xff]  }
  0x3e   :  { %618 = vmatprep.subr.bf16.mxu0 %v846_v2  ;;  %v732_v39 = vld [vmem:[#allocation7 + $0x70] sm:$0xff]   ;;  %v733_v46 = vld [vmem:[#allocation7 + $0x78] sm:$0xff]   ;;  %v734_v47 = vld [vmem:[#allocation7 + $0x80] sm:$0xff]   ;;  %p819_p0 = pnand %p818_p13, %p812_p10 }
  0x3f   :  { %708 = vset.pattern.permute.xlu0 %v847_v9  ;;  %v735_v48 = vld [vmem:[#allocation7 + $0x90] sm:$0xff]   ;;  %v736_v49 = vld [vmem:[#allocation7 + $0x98] sm:$0xff]   ;;  %v737_v50 = vld [vmem:[#allocation7 + $0xa0] sm:$0xff]  }
  0x40   :  { %67 = vperm.xlu0 %708, %v695_v6   ;;  %637 = vmatpush3.bf16.msra.mxu1 %v720_v14  ;;  %v738_v51 = vld [vmem:[#allocation7 + $0xa8] sm:$0xff]   ;;  %v739_v52 = vld [vmem:[#allocation7 + $0xb0] sm:$0xff]   ;;  %v740_v53 = vld [vmem:[#allocation7 + $0xb8] sm:$0xff]  }
  0x41   :  { %619 = vmatpush3.bf16.msra.mxu0 %v713_v8  ;;  %638 = vmatprep.subr.bf16.mxu1 %v846_v2  ;;  %v201_v55 = vld [vmem:[#allocation7 + $0x40] sm:$0x1]  ;;  %v742_v4 = vld [vmem:[#allocation7 + $0xc8] sm:$0xff]  }
  0x42   :  { %620 = vmatprep.subr.bf16.mxu0 %v846_v2  ;;  %v202_v56 = vunpack.c.l.bf16 %v201_v55  ;;  %v313_v5 = vld [vmem:[#allocation7 + $0x88] sm:$0x1] }
  0x43   :  { %v314_v6 = vunpack.c.l.bf16 %v313_v5 }
  0x44   :  { %710 = vset.pattern.permute.xlu0 %v845_v1  ;;  %639 = vmatpush3.bf16.msra.mxu1 %v721_v16  ;;  %v207_v58 = vrot.slane %v202_v56, %v206_v57 }
  0x45   :  { %621 = vmatpush3.bf16.msra.mxu0 %v714_v10  ;;  %640 = vmatprep.subr.bf16.mxu1 %v846_v2  ;;  %v319_v7 = vrot.slane %v314_v6, %v206_v57 }
  0x46   :  { %622 = vmatprep.subr.bf16.mxu0 %v846_v2 }
  0x48   :  { %641 = vmatpush3.bf16.msra.mxu1 %v722_v18 }
  0x49   :  { %623 = vmatpush3.bf16.msra.mxu0 %v715_v11  ;;  %642 = vmatprep.subr.bf16.mxu1 %v846_v2 }
  0x4a   :  { %624 = vmatprep.subr.bf16.mxu0 %v846_v2 }
  0x4c   :  { %643 = vmatpush3.bf16.msra.mxu1 %v723_v19 }
  0x4d   :  { %625 = vmatpush3.bf16.msra.mxu0 %v716_v13  ;;  %644 = vmatprep.subr.bf16.mxu1 %v846_v2 }
  0x4e   :  { %626 = vmatprep.subr.bf16.mxu0 %v846_v2 }
  0x50   :  { %645 = vmatpush3.bf16.msra.mxu1 %v724_v20 }
  0x51   :  { %627 = vmatpush3.bf16.msra.mxu0 %v717_v15  ;;  %646 = vmatprep.subr.bf16.mxu1 %v846_v2  ;;  %v425_v15 = vld [vmem:[#allocation7 + $0xd0] sm:$0x1] }
  0x52   :  { %628 = vmatprep.subr.bf16.mxu0 %v846_v2  ;;  %v426_v16 = vunpack.c.l.bf16 %v425_v15 }
  0x54   :  { %647 = vmatpush3.bf16.msra.mxu1 %v725_v21 }
  0x55   :  { %629 = vmatpush3.bf16.msra.mxu0 %v718_v17  ;;  %648 = vmatprep.subr.bf16.mxu1 %v846_v2  ;;  %v431_v17 = vrot.slane %v426_v16, %v206_v57 }
  0x56   :  { %654 = vmatprep.subr.bf16.mxu0 %v846_v2 }
  0x58   :  { %649 = vmatpush3.bf16.msra.mxu1 %v726_v33 }
  0x59   :  { %674 = vmatprep.subr.bf16.mxu1 %v846_v2 }
  0xba   :  { %v61_v24 = vpop.permute.xlu0 %60  ;;  %v75_v25 = vpop.permute.xlu1 %74 }
  0xbb   :  { %vm62_vm1 = vcmp.eq.s32.totalorder %v61_v24, %v57_v23  ;;  %vm76_vm2 = vcmp.eq.s32.totalorder %v75_v25, %v57_v23 }
  0xbc   :  { %v543_v27 = vsel %vm62_vm1, 1.0, %v846_v2  ;;  %v545_v29 = vsel %vm76_vm2, 1.0, %v846_v2 }
  0xbf   :  { %v68_v26 = vpop.permute.xlu0 %67 }
  0xc0   :  { %vm69_vm3 = vcmp.eq.s32.totalorder %v68_v26, %v57_v23 }
  0xc1   :  { %v544_v28 = vsel %vm69_vm3, 1.0, %v846_v2 }
  0xc2   :  { %v72_v30 = vadd.f32 %v544_v28, %v543_v27 }
  0xc4   :  { %v79_v31 = vadd.f32 %v545_v29, %v72_v30 }
  0xc6   :  { %v80_v32 = vpack.c.bf16 %v79_v31, %v79_v31 }
  0xc8   :  { %631 = vmatmul.mubr.bf16.vlgmr.msra.gmra.mrb[0].mxu0 %v80_v32 }
  0xc9   :  { %670 = vmatprep.mubr.msk.bf16.mxu0 %vm848_vm0, %v846_v2  ;;  %655 = vmatpush3.bf16.msra.mxu0 %v727_v34 }
  0xca   :  { %656 = vmatprep.subr.bf16.mxu0 %v846_v2 }
  0xcd   :  { %657 = vmatpush3.bf16.msra.mxu0 %v728_v35 }
  0xce   :  { %658 = vmatprep.subr.bf16.mxu0 %v846_v2 }
  0xd1   :  { %659 = vmatpush3.bf16.msra.mxu0 %v729_v36 }
  0xd2   :  { %660 = vmatprep.subr.bf16.mxu0 %v846_v2 }
  0xd5   :  { %661 = vmatpush3.bf16.msra.mxu0 %v730_v37 }
  0xd6   :  { %662 = vmatprep.subr.bf16.mxu0 %v846_v2 }
  0xd9   :  { %663 = vmatpush3.bf16.msra.mxu0 %v731_v38 }
  0xda   :  { %664 = vmatprep.subr.bf16.mxu0 %v846_v2 }
  0xdd   :  { %665 = vmatpush3.bf16.msra.mxu0 %v732_v39 }
  0xde   :  { %666 = vmatprep.subr.bf16.mxu0 %v846_v2 }
  0xe1   :  { %667 = vmatpush3.bf16.msra.mxu0 %v733_v46 }
  0xe2   :  { %668 = vmatprep.subr.bf16.mxu0 %v846_v2 }
  0xe5   :  { %669 = vmatpush3.bf16.msra.mxu0 %v734_v47 }
 0x19b   :  { %v179_v40 = vpop.f32.mrb[0].mxu0 }
 0x19c   :  { %v180_v41 = vadd.f32 %v179_v40, %v914_v3  ;;  %v632_v42 = vpop.f32.mrb[1].mxu0  ;;  %v741_v3 = vld [vmem:[#allocation7 + $0xc0] sm:$0xff]  }
 0x19d   :  { %v182_v43 = vpop.f32.mrb[2].mxu0 }
 0x19e   :  { %v203_v44 = vpack.c.bf16 %v180_v41, %v180_v41  ;;  %v633_v45 = vpop.f32.mrb[3].mxu0 }
 0x1a0   :  { %651 = vmatmul.mubr.bf16.vlgmr.msra.gmra.mrb[0].mxu1 %v203_v44 }
 0x1a1   :  { %690 = vmatprep.mubr.msk.bf16.mxu1 %vm848_vm0, %v846_v2  ;;  %675 = vmatpush3.bf16.msra.mxu1 %v735_v48 }
 0x1a2   :  { %676 = vmatprep.subr.bf16.mxu1 %v846_v2 }
 0x1a5   :  { %677 = vmatpush3.bf16.msra.mxu1 %v736_v49 }
 0x1a6   :  { %678 = vmatprep.subr.bf16.mxu1 %v846_v2 }
 0x1a9   :  { %679 = vmatpush3.bf16.msra.mxu1 %v737_v50 }
 0x1aa   :  { %680 = vmatprep.subr.bf16.mxu1 %v846_v2 }
 0x1ad   :  { %681 = vmatpush3.bf16.msra.mxu1 %v738_v51 }
 0x1ae   :  { %682 = vmatprep.subr.bf16.mxu1 %v846_v2 }
 0x1b1   :  { %683 = vmatpush3.bf16.msra.mxu1 %v739_v52 }
 0x1b2   :  { %684 = vmatprep.subr.bf16.mxu1 %v846_v2 }
 0x1b5   :  { %685 = vmatpush3.bf16.msra.mxu1 %v740_v53 }
 0x1b6   :  { %686 = vmatprep.subr.bf16.mxu1 %v846_v2 }
 0x1b9   :  { %687 = vmatpush3.bf16.msra.mxu1 %v741_v3 }
 0x1ba   :  { %688 = vmatprep.subr.bf16.mxu1 %v846_v2 }
 0x1bd   :  { %689 = vmatpush3.bf16.msra.mxu1 %v742_v4 }
 0x273   :  { %v290_v59 = vpop.f32.mrb[0].mxu1 }
 0x274   :  { %v291_v60 = vadd.f32 %v290_v59, %v207_v58  ;;  %v652_v61 = vpop.f32.mrb[1].mxu1 }
 0x275   :  { %v293_v62 = vpop.f32.mrb[2].mxu1 }
 0x276   :  { %v296_v63 = vmax.f32 %v291_v60, 0.0  ;;  %v653_v0 = vpop.f32.mrb[3].mxu1 }
 0x278   :  { %v315_v1 = vpack.c.bf16 %v296_v63, %v296_v63 }
 0x27a   :  { %671 = vmatmul.mubr.bf16.vlgmr.msra.gmra.mrb[4].mxu0 %v315_v1 }
 0x34d   :  { %v402_v8 = vpop.f32.mrb[4].mxu0 }
 0x34e   :  { %v403_v9 = vadd.f32 %v402_v8, %v319_v7  ;;  %v672_v10 = vpop.f32.mrb[5].mxu0 }
 0x34f   :  { %v405_v11 = vpop.f32.mrb[6].mxu0 }
 0x350   :  { %v408_v12 = vmax.f32 %v403_v9, 0.0  ;;  %v673_v13 = vpop.f32.mrb[7].mxu0 }
 0x352   :  { %v427_v14 = vpack.c.bf16 %v408_v12, %v408_v12 }
 0x354   :  { %691 = vmatmul.mubr.bf16.vlgmr.msra.gmra.mrb[4].mxu1 %v427_v14 }
 0x427   :  { %v514_v18 = vpop.f32.mrb[4].mxu1 }
 0x428   :  { %v515_v19 = vadd.f32 %v514_v18, %v431_v17  ;;  %v692_v20 = vpop.f32.mrb[5].mxu1 }
 0x429   :  { %v517_v2 = vpop.f32.mrb[6].mxu1 }
 0x42a   :  { %v693_v21 = vpop.f32.mrb[7].mxu1  ;;  %v520_v22 = vmul.f32 %v515_v19, %v515_v19 }
 0x42c   :  { %521 = vadd.xlane.f32.xlu1 %v520_v22 }
 0x4b9   :  { %v522_v23 = vpop.xlane.xlu1 %521 }
 0x4ba   :  { %v523_v24 = vmax.f32 %v522_v23, 1e-24 }
 0x4bc   :  { %743 = vrsqrt.f32 %v523_v24 }
 0x4c6   :  { %v744_v25 = vpop.eup %743 }
 0x4c7   :  { %v525_v26 = vmul.f32 %v744_v25, %v515_v19 }
 0x4c9   :  { %526 = vst [vmem:[#allocation8] sm:$0xff] %v525_v26 }
 0x4ca   :  { %822 = shalt.err (!%p819_p0)
}
 0x4cb   :  { %s823_s25 = scalar_lea.hbm %s976_s3, 128 }
 0x4cc   :  { %p824_p1 = scmp.ne.s32.totalorder %s976_s3, %s823_s25  ;;  %p827_p2 = scmp.lt.u32.totalorder %s823_s25, %s976_s3 }
 0x4ce   :  { %p829_p3 = pnand %p827_p2, %p824_p1 }
 0x4d0   :  { %832 = shalt.err (!%p829_p3)
}
 0x4d1   :  { %536 = dma.vmem_to_hbm [thread:$0]  %s534_s21, 128, %s976_s3, [#allocation4]  }
 0x4d2   :  { %837 = dma.done.wait [#allocation4], 128  }
 0x4d3   :  { %838 = vsyncadd [#allocation4], 4294967168 }
 0x4d4   :  { %540 = vsyncpa [#allocation3], 1 }
 0x4d5   :  { %541 = vsyncpa [#allocation6], 1 }
 0x4d6   :  { %542 = vsyncpa [#allocation4], 1 }

</bundles_post_ra>
